<compile_context>
chip_gen: v7x
topology: tpu7x:2x2x1
jax: 0.10.0
libtpu: 0.0.40
codegen_flags: <defaults>
</compile_context>

<pallas_src>
import functools
import math

import jax
import jax.numpy as jnp
from jax.experimental import pallas as pl
from jax.experimental.pallas import tpu as pltpu

_EPS = 1e-12
_TARGET_BLOCK_BYTES = 4 * 1024 * 1024   # in+out double-buffered => ~16 MiB VMEM
_VMEM_LIMIT_BYTES = 32 * 1024 * 1024    # safe on v5e/v6e/v7x (phys 128/128/64 MiB)
_MAX_PACK_CHUNK = 1024                  # cap on lcm(D,128) for the packed path


def _abs_pow(x, p: float):
    """|x|**p with cheap special cases (avoid per-element exp/log on the EUP)."""
    if p == 1.0:
        return jnp.abs(x)
    if p == 2.0:
        return x * x
    if p == 3.0:
        a = jnp.abs(x)
        return a * a * a
    if p == 4.0:
        x2 = x * x
        return x2 * x2
    return jnp.power(jnp.abs(x), p)


def _root(s, p: float):
    """s ** (1/p), applied only to the small per-row reduction vector."""
    if p == 1.0:
        return s
    if p == 2.0:
        return jnp.sqrt(s)
    return jnp.power(s, 1.0 / p)


def _lp_rows_kernel(x_ref, o_ref, *, p: float):
    """Tile (tm, D), D >= 128: normalized axis is the lane (last) axis."""
    x = x_ref[...].astype(jnp.float32)
    s = jnp.sum(_abs_pow(x, p), axis=-1, keepdims=True)     # (tm, 1)
    inv = 1.0 / (_root(s, p) + _EPS)                         # one recip per row
    o_ref[...] = (x * inv).astype(o_ref.dtype)


def _lp_packed_kernel(x_ref, bd_ref, bdt_ref, o_ref, *, p: float):
    """Tile (tm, chunk): each lane-dense row packs G logical rows of length D.

    bd  : (chunk, G) block-diagonal ones  -> per-segment sums via MXU.
    bdT : (G, chunk)                      -> broadcast-back via MXU.
    The MXU is idle in this memory-bound kernel, so both matmuls are free-ish;
    HIGHEST precision keeps the f32 accuracy of the sums / scales.
    """
    x = x_ref[...].astype(jnp.float32)
    a = _abs_pow(x, p)
    s = jnp.dot(a, bd_ref[...],
                precision=jax.lax.Precision.HIGHEST,
                preferred_element_type=jnp.float32)           # (tm, G)
    inv = 1.0 / (_root(s, p) + _EPS)                          # one recip / row
    scale = jnp.dot(inv, bdt_ref[...],
                    precision=jax.lax.Precision.HIGHEST,
                    preferred_element_type=jnp.float32)        # (tm, chunk)
    o_ref[...] = (x * scale).astype(o_ref.dtype)


def _lp_cols_kernel(x_ref, o_ref, *, p: float):
    """Lane-dense tile (D, tn): normalized axis is the sublane (first) axis."""
    x = x_ref[...].astype(jnp.float32)
    s = jnp.sum(_abs_pow(x, p), axis=0, keepdims=True)        # (1, tn)
    inv = 1.0 / (_root(s, p) + _EPS)                           # one recip / col
    o_ref[...] = (x * inv).astype(o_ref.dtype)


def _compiler_params():
    return pltpu.CompilerParams(
        dimension_semantics=("parallel",),
        vmem_limit_bytes=_VMEM_LIMIT_BYTES,
    )


def lp_module(x: jax.Array, p: float = 2.0) -> jax.Array:
    """JAX/Pallas equivalent of LpModule(p).forward(x)."""
    p = float(p)
    orig_shape = x.shape
    d = int(orig_shape[-1])
    rows = int(math.prod(orig_shape[:-1])) if len(orig_shape) > 1 else 1
    x2d = x.reshape(rows, d)
    itemsize = jnp.dtype(x.dtype).itemsize
    row_mult = {4: 8, 2: 16, 1: 32}.get(itemsize, 8)

    # Packed-path feasibility for lane-sparse D.
    chunk = d * 128 // math.gcd(d, 128)       # lcm(D, 128)
    g = chunk // d
    use_packed = (d < 128) and (chunk <= _MAX_PACK_CHUNK) and (rows % g == 0)

    if d >= 128:
        # ---- natural path: (rows, D), reduce along lanes ----
        # TODO(synk): for pathologically large D a single (row_mult, D) block
        # could exceed VMEM; would need a two-pass lane-tiled reduction.
        tm = max(_TARGET_BLOCK_BYTES // max(d * itemsize, 1), row_mult)
        tm = (tm // row_mult) * row_mult
        if tm >= rows:
            tm = rows                        # full first dim is a legal block
        out2d = pl.pallas_call(
            functools.partial(_lp_rows_kernel, p=p),
            out_shape=jax.ShapeDtypeStruct((rows, d), x.dtype),
            grid_spec=pltpu.PrefetchScalarGridSpec(
                num_scalar_prefetch=0,
                grid=(pl.cdiv(rows, tm),),
                in_specs=[pl.BlockSpec((tm, d), lambda i: (i, 0))],
                out_specs=pl.BlockSpec((tm, d), lambda i: (i, 0)),
            ),
            compiler_params=_compiler_params(),
        )(x2d)

    elif use_packed:
        # ---- packed lane-dense path: free reshape to (rows/G, chunk) ----
        grouped_rows = rows // g
        xg = x2d.reshape(grouped_rows, chunk)      # row-major => no data movement
        seg = jnp.arange(chunk, dtype=jnp.int32) // d
        bd = (seg[:, None] == jnp.arange(g, dtype=jnp.int32)[None, :]).astype(
            jnp.float32)                            # (chunk, G) block-diag ones
        bdt = bd.T                                  # (G, chunk)
        tm = max(_TARGET_BLOCK_BYTES // max(chunk * itemsize, 1), row_mult)
        tm = (tm // row_mult) * row_mult
        if tm >= grouped_rows:
            tm = grouped_rows
        out_g = pl.pallas_call(
            functools.partial(_lp_packed_kernel, p=p),
            out_shape=jax.ShapeDtypeStruct((grouped_rows, chunk), x.dtype),
            grid_spec=pltpu.PrefetchScalarGridSpec(
                num_scalar_prefetch=0,
                grid=(pl.cdiv(grouped_rows, tm),),
                in_specs=[
                    pl.BlockSpec((tm, chunk), lambda i: (i, 0)),
                    pl.BlockSpec((chunk, g), lambda i: (0, 0)),   # fetched once
                    pl.BlockSpec((g, chunk), lambda i: (0, 0)),   # fetched once
                ],
                out_specs=pl.BlockSpec((tm, chunk), lambda i: (i, 0)),
            ),
            compiler_params=_compiler_params(),
        )(xg, bd, bdt)
        out2d = out_g.reshape(rows, d)

    else:
        # ---- fallback: transpose to a lane-dense (D, rows) slab ----
        xt = x2d.T
        tn = max(_TARGET_BLOCK_BYTES // max(d * itemsize, 1), 128)
        tn = (tn // 128) * 128
        if tn >= rows:
            tn = rows                        # full last dim is a legal block
        out_t = pl.pallas_call(
            functools.partial(_lp_cols_kernel, p=p),
            out_shape=jax.ShapeDtypeStruct((d, rows), x.dtype),
            grid_spec=pltpu.PrefetchScalarGridSpec(
                num_scalar_prefetch=0,
                grid=(pl.cdiv(rows, tn),),
                in_specs=[pl.BlockSpec((d, tn), lambda i: (0, i))],
                out_specs=pl.BlockSpec((d, tn), lambda i: (0, i)),
            ),
            compiler_params=_compiler_params(),
        )(xt)
        out2d = out_t.T

    return out2d.reshape(orig_shape)


if __name__ == "__main__":
    key = jax.random.PRNGKey(0)
    # NCHW-like input; normalization over the last axis, matching
    # torch.norm(x, p, dim=-1).unsqueeze(-1).
    x = jax.random.normal(key, (2, 4, 16, 16), dtype=jnp.float32)
    p = 2.0
    out = jax.block_until_ready(lp_module(x, p=p))
    ref_norm = jnp.power(
        jnp.sum(jnp.power(jnp.abs(x), p), axis=-1, keepdims=True), 1.0 / p
    )
    ref = x / (ref_norm + 1e-12)
    assert out.shape == x.shape
    assert jnp.allclose(out, ref, atol=1e-5, rtol=1e-5)

    # Exercise the natural (D >= 128, lane-axis reduction) path.
    x2 = jax.random.normal(jax.random.PRNGKey(1), (8, 256), dtype=jnp.float32)
    out2 = jax.block_until_ready(lp_module(x2, p=2.0))
    ref2 = x2 / (jnp.sqrt(jnp.sum(x2 * x2, axis=-1, keepdims=True)) + 1e-12)
    assert jnp.allclose(out2, ref2, atol=1e-5, rtol=1e-5)

    # Exercise the transpose fallback (rows not divisible by the pack group).
    x3 = jax.random.normal(jax.random.PRNGKey(2), (3, 16), dtype=jnp.float32)
    out3 = jax.block_until_ready(lp_module(x3, p=3.0))
    ref3 = x3 / (
        jnp.power(jnp.sum(jnp.abs(x3) ** 3, axis=-1, keepdims=True), 1.0 / 3)
        + 1e-12
    )
    assert jnp.allclose(out3, ref3, atol=1e-5, rtol=1e-5)

    print("KERNEL_OK")
</pallas_src>

<mosaic_0001>
module attributes {stable_mosaic.version = 11 : i64} {
  func.func @_lp_packed_kernel(%arg0: i32, %arg1: memref<16x128xf32, #tpu.memory_space<vmem>>, %arg2: memref<128x8xf32, #tpu.memory_space<vmem>>, %arg3: memref<8x128xf32, #tpu.memory_space<vmem>>, %arg4: memref<16x128xf32, #tpu.memory_space<vmem>>) attributes {dimension_semantics = [#tpu.dimension_semantics<parallel>], iteration_bounds = array<i64: 1>, scalar_prefetch = 0 : i64, scratch_operands = 0 : i64, tpu.core_type = #tpu.core_type<tc>, window_params = [{transform_indices = @transform_0, window_bounds = array<i64: 16, 128>}, {pipeline_mode = #tpu.pipeline_mode<synchronous>, transform_indices = @transform_1, window_bounds = array<i64: 128, 8>}, {pipeline_mode = #tpu.pipeline_mode<synchronous>, transform_indices = @transform_2, window_bounds = array<i64: 8, 128>}, {transform_indices = @transform_3, window_bounds = array<i64: 16, 128>}]} {
    %c0 = arith.constant 0 : index
    %c0_0 = arith.constant 0 : index
    %0 = vector.load %arg1[%c0, %c0_0] : memref<16x128xf32, #tpu.memory_space<vmem>>, vector<16x128xf32>
    %1 = arith.mulf %0, %0 : vector<16x128xf32>
    %c0_1 = arith.constant 0 : index
    %c0_2 = arith.constant 0 : index
    %2 = vector.load %arg2[%c0_1, %c0_2] : memref<128x8xf32, #tpu.memory_space<vmem>>, vector<128x8xf32>
    %cst = arith.constant dense<0.000000e+00> : vector<16x8xf32>
    %3 = tpu.matmul %1, %2, %cst {dimension_numbers = #tpu.dot_dimension_numbers<[1], [0], [0], [1], [0, 0, 1, 1], [], []>, precision = #tpu.contract_precision<fp32>} : vector<16x128xf32>, vector<128x8xf32>, vector<16x8xf32> -> vector<16x8xf32>
    %4 = math.sqrt %3 : vector<16x8xf32>
    %cst_3 = arith.constant 9.99999996E-13 : f32
    %5 = vector.broadcast %cst_3 : f32 to vector<16x8xf32>
    %6 = arith.addf %4, %5 : vector<16x8xf32>
    %cst_4 = arith.constant 1.000000e+00 : f32
    %7 = vector.broadcast %cst_4 : f32 to vector<16x8xf32>
    %8 = arith.divf %7, %6 : vector<16x8xf32>
    %c0_5 = arith.constant 0 : index
    %c0_6 = arith.constant 0 : index
    %9 = vector.load %arg3[%c0_5, %c0_6] : memref<8x128xf32, #tpu.memory_space<vmem>>, vector<8x128xf32>
    %cst_7 = arith.constant dense<0.000000e+00> : vector<16x128xf32>
    %10 = tpu.matmul %8, %9, %cst_7 {dimension_numbers = #tpu.dot_dimension_numbers<[1], [0], [0], [1], [0, 0, 1, 1], [], []>, precision = #tpu.contract_precision<fp32>} : vector<16x8xf32>, vector<8x128xf32>, vector<16x128xf32> -> vector<16x128xf32>
    %11 = arith.mulf %0, %10 : vector<16x128xf32>
    %c0_8 = arith.constant 0 : index
    %c0_9 = arith.constant 0 : index
    %12 = vector.load %arg4[%c0_8, %c0_9] : memref<16x128xf32, #tpu.memory_space<vmem>>, vector<16x128xf32>
    tpu.vector_store %arg4[%c0_8, %c0_9], %11 {strides = array<i32>} : memref<16x128xf32, #tpu.memory_space<vmem>>, vector<16x128xf32>,
    return
  }
  func.func @transform_0(%arg0: i32) -> (i32, i32) {
    %c0_i32 = arith.constant 0 : i32
    %c0_i32_0 = arith.constant 0 : i32
    return %arg0, %c0_i32 : i32, i32
  }
  func.func @transform_1(%arg0: i32) -> (i32, i32) {
    %c0_i32 = arith.constant 0 : i32
    %c0_i32_0 = arith.constant 0 : i32
    %c0_i32_1 = arith.constant 0 : i32
    return %c0_i32, %c0_i32_0 : i32, i32
  }
  func.func @transform_2(%arg0: i32) -> (i32, i32) {
    %c0_i32 = arith.constant 0 : i32
    %c0_i32_0 = arith.constant 0 : i32
    %c0_i32_1 = arith.constant 0 : i32
    return %c0_i32, %c0_i32_0 : i32, i32
  }
  func.func @transform_3(%arg0: i32) -> (i32, i32) {
    %c0_i32 = arith.constant 0 : i32
    %c0_i32_0 = arith.constant 0 : i32
    return %arg0, %c0_i32 : i32, i32
  }
}

</mosaic_0001>

<bundles_post_ra>
// kernel: tpu_custom_call.1
= control target key start
LH: loop header
LB: loop body
LE: loop exit
PB: predicated region body
PF: predicated region fallthrough
CT: control target
= control target key end

     0   :  { %s2242_s0 = inlined_call_operand.vmem [shape: f32[16,128], index: 0, kind: input, shape index: {}]   ;;  %s2243_s1 = inlined_call_operand.vmem [shape: f32[128,8], index: 1, kind: input, shape index: {}]   ;;  %s2244_s2 = inlined_call_operand.vmem [shape: f32[8,128], index: 2, kind: input, shape index: {}]   ;;  %s2245_s3 = inlined_call_operand.hbm [shape: f32[16,128], index: 3, kind: output, shape index: {}]  }
   0x1   :  { %v19_v0 = vld [vmem:[%s2243_s1] sm:$0xff]  ;;  %v20_v1 = vld [vmem:[%s2243_s1 + $0x8] sm:$0xff]  ;;  %v21_v2 = vld [vmem:[%s2243_s1 + $0x10] sm:$0xff] }
   0x2   :  { %v36_v3 = vand.u32 4294901760, %v19_v0  ;;  %v39_v4 = vand.u32 4294901760, %v20_v1  ;;  %v22_v5 = vld [vmem:[%s2243_s1 + $0x18] sm:$0xff]  ;;  %v42_v6 = vand.u32 4294901760, %v21_v2  ;;  %v1907_v7 = vld [vmem:[%s2243_s1 + $0x20] sm:$0xff]  ;;  %v1912_v8 = vld [vmem:[%s2243_s1 + $0x28] sm:$0xff] }
   0x3   :  { %v45_v9 = vand.u32 4294901760, %v22_v5  ;;  %v48_v11 = vand.u32 4294901760, %v1907_v7  ;;  %v51_v12 = vand.u32 4294901760, %v1912_v8  ;;  %v1923_v14 = vld [vmem:[%s2243_s1 + $0x30] sm:$0xff]  ;;  %v1928_v15 = vld [vmem:[%s2243_s1 + $0x38] sm:$0xff]  ;;  %v1935_v16 = vld [vmem:[%s2242_s0] sm:$0xff] }
   0x4   :  { %v1914_v10 = vpack.c.bf16 %v39_v4, %v36_v3  ;;  %v17_v17 = vmul.f32 %v1935_v16, %v1935_v16 }
   0x5   :  { %v1918_v13 = vpack.c.bf16 %v45_v9, %v42_v6 }
   0x6   :  { %1623 = vmatprep.subr.bf16.mxu1 %v1914_v10  ;;  %1719 = vmatprep.subr.bf16.mxu0 %v1914_v10 }
   0x7   :  { %1625 = vmatpush3.bf16.msra.mxu1 %v1914_v10  ;;  %1721 = vmatpush3.bf16.msra.mxu0 %v1914_v10 }
   0x8   :  { %8 = vsyncpa [#allocation3], 0  ;;  %1627 = vmatprep.subr.bf16.mxu1 %v1918_v13  ;;  %1723 = vmatprep.subr.bf16.mxu0 %v1918_v13  ;;  %v1947_v18 = vpack.c.bf16 %v51_v12, %v48_v11  ;;  %v54_v19 = vand.u32 4294901760, %v1923_v14  ;;  %v57_v20 = vand.u32 4294901760, %v1928_v15  ;;  %v1954_v21 = vld [vmem:[%s2243_s1 + $0x40] sm:$0xff]  ;;  %v1959_v22 = vld [vmem:[%s2243_s1 + $0x48] sm:$0xff]  ;;  %v1999_v34 = vsub.f32 %v19_v0, %v36_v3 }
   0x9   :  { %v1961_v23 = vand.u32 4294901760, %v17_v17  ;;  %v1971_v25 = vld [vmem:[%s2242_s0 + $0x8] sm:$0xff]  ;;  %v60_v27 = vand.u32 4294901760, %v1954_v21  ;;  %v63_v28 = vand.u32 4294901760, %v1959_v22  ;;  %v1986_v29 = vld [vmem:[%s2243_s1 + $0x50] sm:$0xff]  ;;  %v1991_v30 = vld [vmem:[%s2243_s1 + $0x58] sm:$0xff]  ;;  %v2011_v38 = vsub.f32 %v20_v1, %v39_v4 }
   0xa   :  { %v1979_v26 = vpack.c.bf16 %v57_v20, %v54_v19  ;;  %v18_v32 = vmul.f32 %v1971_v25, %v1971_v25  ;;  %v66_v36 = vand.u32 4294901760, %v1986_v29  ;;  %v69_v37 = vand.u32 4294901760, %v1991_v30  ;;  %v2016_v39 = vld [vmem:[%s2243_s1 + $0x60] sm:$0xff]  ;;  %v2021_v40 = vld [vmem:[%s2243_s1 + $0x68] sm:$0xff]  ;;  %v2030_v43 = vld [vmem:[%s2243_s1 + $0x70] sm:$0xff] }
   0xb   :  { %1629 = vmatpush3.bf16.msra.mxu1 %v1918_v13  ;;  %1725 = vmatpush3.bf16.msra.mxu0 %v1918_v13  ;;  %v1966_v24 = vsub.f32 %v17_v17, %v1961_v23  ;;  %v2007_v35 = vpack.c.bf16 %v63_v28, %v60_v27  ;;  %v139_v44 = vand.u32 4294901760, %v1999_v34  ;;  %v2033_v45 = vsub.f32 %v21_v2, %v42_v6  ;;  %v2050_v50 = vld [vmem:[%s2243_s1 + $0x78] sm:$0xff] }
   0xc   :  { %1631 = vmatprep.subr.bf16.mxu1 %v1947_v18  ;;  %1727 = vmatprep.subr.bf16.mxu0 %v1947_v18  ;;  %v2023_v42 = vand.u32 4294901760, %v18_v32  ;;  %v2035_v46 = vsub.f32 %v22_v5, %v45_v9  ;;  %v2043_v47 = vpack.c.bf16 %v69_v37, %v66_v36  ;;  %v72_v48 = vand.u32 4294901760, %v2016_v39 }
   0xd   :  { %v118_v31 = vand.u32 4294901760, %v1966_v24  ;;  %v75_v49 = vand.u32 4294901760, %v2021_v40  ;;  %v146_v51 = vand.u32 4294901760, %v2011_v38  ;;  %v78_v52 = vand.u32 4294901760, %v2030_v43 }
   0xe   :  { %v2055_v53 = vsub.f32 %v18_v32, %v2023_v42  ;;  %v2060_v54 = vsub.f32 %v1907_v7, %v48_v11  ;;  %v81_v55 = vand.u32 4294901760, %v2050_v50  ;;  %v140_v56 = vsub.f32 %v1999_v34, %v139_v44 }
   0xf   :  { %1633 = vmatpush3.bf16.msra.mxu1 %v1947_v18  ;;  %1729 = vmatpush3.bf16.msra.mxu0 %v1947_v18  ;;  %v119_v33 = vsub.f32 %v1966_v24, %v118_v31  ;;  %v153_v57 = vand.u32 4294901760, %v2033_v45  ;;  %v160_v58 = vand.u32 4294901760, %v2035_v46  ;;  %v2074_v59 = vpack.c.bf16 %v75_v49, %v72_v48 }
  0x10   :  { %1635 = vmatprep.subr.bf16.mxu1 %v1979_v26  ;;  %1731 = vmatprep.subr.bf16.mxu0 %v1979_v26  ;;  %v147_v60 = vsub.f32 %v2011_v38, %v146_v51  ;;  %v2080_v61 = vsub.f32 %v1912_v8, %v51_v12  ;;  %v128_v62 = vand.u32 4294901760, %v2055_v53  ;;  %v167_v63 = vand.u32 4294901760, %v2060_v54 }
  0x11   :  { %v120_v41 = vand.u32 4294901760, %v119_v33  ;;  %1519 = vmatprep.mubr.f32.mxu0 %v118_v31  ;;  %v2090_v0 = vpack.c.bf16 %v81_v55, %v78_v52  ;;  %v141_v1 = vand.u32 4294901760, %v140_v56  ;;  %v154_v2 = vsub.f32 %v2033_v45, %v153_v57 }
  0x12   :  { %v161_v3 = vsub.f32 %v2035_v46, %v160_v58  ;;  %v148_v4 = vand.u32 4294901760, %v147_v60  ;;  %v174_v5 = vand.u32 4294901760, %v2080_v61  ;;  %v2100_v6 = vsub.f32 %v1923_v14, %v54_v19 }
  0x13   :  { %1637 = vmatpush3.bf16.msra.mxu1 %v1979_v26  ;;  %1733 = vmatpush3.bf16.msra.mxu0 %v1979_v26  ;;  %v2105_v7 = vsub.f32 %v1928_v15, %v57_v20  ;;  %v1750_v8 = vpack.c.bf16 %v146_v51, %v139_v44  ;;  %v129_v9 = vsub.f32 %v2055_v53, %v128_v62  ;;  %v155_v12 = vand.u32 4294901760, %v154_v2 }
  0x14   :  { %1639 = vmatprep.subr.bf16.mxu1 %v2007_v35  ;;  %1735 = vmatprep.subr.bf16.mxu0 %v2007_v35  ;;  %v168_v11 = vsub.f32 %v2060_v54, %v167_v63  ;;  %v162_v17 = vand.u32 4294901760, %v161_v3  ;;  %v2114_v14 = vsub.f32 %v1954_v21, %v60_v27  ;;  %v2119_v15 = vsub.f32 %v1959_v22, %v63_v28 }
  0x15   :  { %1414 = vmatprep.mubr.f32.mxu1 %v120_v41  ;;  %v1654_v19 = vpack.c.bf16 %v148_v4, %v141_v1  ;;  %v175_v20 = vsub.f32 %v2080_v61, %v174_v5  ;;  %v181_v31 = vand.u32 4294901760, %v2100_v6  ;;  %v188_v32 = vand.u32 4294901760, %v2105_v7 }
  0x16   :  { %v130_v33 = vand.u32 4294901760, %v129_v9  ;;  %v1754_v41 = vpack.c.bf16 %v160_v58, %v153_v57  ;;  %v169_v21 = vand.u32 4294901760, %v168_v11  ;;  %v195_v22 = vand.u32 4294901760, %v2114_v14 }
  0x17   :  { %1641 = vmatpush3.bf16.msra.mxu1 %v2007_v35  ;;  %1737 = vmatpush3.bf16.msra.mxu0 %v2007_v35  ;;  %v202_v27 = vand.u32 4294901760, %v2119_v15  ;;  %v2133_v28 = vsub.f32 %v1986_v29, %v66_v36  ;;  %v2138_v44 = vsub.f32 %v1991_v30, %v69_v37  ;;  %v1658_v51 = vpack.c.bf16 %v162_v17, %v155_v12 }
  0x18   :  { %1643 = vmatprep.subr.bf16.mxu1 %v2043_v47  ;;  %1739 = vmatprep.subr.bf16.mxu0 %v2043_v47  ;;  %v176_v56 = vand.u32 4294901760, %v175_v20  ;;  %v182_v57 = vsub.f32 %v2100_v6, %v181_v31  ;;  %v189_v58 = vsub.f32 %v2105_v7, %v188_v32  ;;  %v1758_v60 = vpack.c.bf16 %v174_v5, %v167_v63 }
  0x19   :  { %v2145_v29 = vsub.f32 %v2016_v39, %v72_v48  ;;  %v196_v30 = vsub.f32 %v2114_v14, %v195_v22  ;;  %v203_v36 = vsub.f32 %v2119_v15, %v202_v27  ;;  %v209_v37 = vand.u32 4294901760, %v2133_v28 }
  0x1a   :  { %v216_v1 = vand.u32 4294901760, %v2138_v44  ;;  %v1662_v2 = vpack.c.bf16 %v176_v56, %v169_v21  ;;  %v190_v63 = vand.u32 4294901760, %v189_v58  ;;  %v2154_v39 = vsub.f32 %v2021_v40, %v75_v49 }
  0x1b   :  { %1645 = vmatpush3.bf16.msra.mxu1 %v2043_v47  ;;  %1741 = vmatpush3.bf16.msra.mxu0 %v2043_v47  ;;  %v1762_v48 = vpack.c.bf16 %v188_v32, %v181_v31  ;;  %v223_v3 = vand.u32 4294901760, %v2145_v29  ;;  %v197_v4 = vand.u32 4294901760, %v196_v30  ;;  %v204_v5 = vand.u32 4294901760, %v203_v36 }
  0x1c   :  { %1647 = vmatprep.subr.bf16.mxu1 %v2074_v59  ;;  %1743 = vmatprep.subr.bf16.mxu0 %v2074_v59  ;;  %v217_v9 = vsub.f32 %v2138_v44, %v216_v1  ;;  %v230_v40 = vand.u32 4294901760, %v2154_v39  ;;  %v2165_v49 = vsub.f32 %v2030_v43, %v78_v52  ;;  %v2170_v12 = vsub.f32 %v2050_v50, %v81_v55 }
  0x1d   :  { %v1766_v17 = vpack.c.bf16 %v202_v27, %v195_v22  ;;  %v224_v31 = vsub.f32 %v2145_v29, %v223_v3  ;;  %v1670_v32 = vpack.c.bf16 %v204_v5, %v197_v4  ;;  %v1770_v50 = vpack.c.bf16 %v216_v1, %v209_v37 }
  0x1e   :  { %v218_v20 = vand.u32 4294901760, %v217_v9  ;;  %v237_v43 = vand.u32 4294901760, %v2165_v49  ;;  %v244_v52 = vand.u32 4294901760, %v2170_v12  ;;  %v1774_v56 = vpack.c.bf16 %v230_v40, %v223_v3 }
  0x1f   :  { %1649 = vmatpush3.bf16.msra.mxu1 %v2074_v59  ;;  %1745 = vmatpush3.bf16.msra.mxu0 %v2074_v59  ;;  %v225_v55 = vand.u32 4294901760, %v224_v31  ;;  %v1686_v36 = vpack.c.bf16 %v2011_v38, %v1999_v34  ;;  %v1694_v34 = vpack.c.bf16 %v2080_v61, %v2060_v54  ;;  %v1698_v38 = vpack.c.bf16 %v2105_v7, %v2100_v6 }
  0x20   :  { %1651 = vmatprep.subr.bf16.mxu1 %v2090_v0  ;;  %1747 = vmatprep.subr.bf16.mxu0 %v2090_v0  ;;  %v238_v22 = vsub.f32 %v2165_v49, %v237_v43  ;;  %v245_v27 = vsub.f32 %v2170_v12, %v244_v52  ;;  %v1778_v30 = vpack.c.bf16 %v244_v52, %v237_v43  ;;  %vm740_vm4 = vcmask 64512  }
  0x22   :  { %v246_v58 = vand.u32 4294901760, %v245_v27 }
  0x23   :  { %1653 = vmatpush3.bf16.msra.mxu1 %v2090_v0  ;;  %1749 = vmatpush3.bf16.msra.mxu0 %v2090_v0 }
  0x24   :  { %1655 = vmatprep.subr.bf16.mxu1 %v1654_v19  ;;  %1751 = vmatprep.subr.bf16.mxu0 %v1750_v8 }
  0x26   :  { %1415 = vmatmul.mubr.f32.vlgmr.msra.gmra.mrb[0].mxu1 %v130_v33  ;;  %1520 = vmatmul.mubr.f32.vlgmr.msra.gmra.mrb[0].mxu0 %v128_v62  ;;  %v183_v62 = vand.u32 4294901760, %v182_v57  ;;  %v231_v33 = vsub.f32 %v2154_v39, %v230_v40  ;;  %v239_v57 = vand.u32 4294901760, %v238_v22 }
  0x27   :  { %1657 = vmatpush3.bf16.msra.mxu1 %v1654_v19  ;;  %1753 = vmatpush3.bf16.msra.mxu0 %v1750_v8  ;;  %v210_v8 = vsub.f32 %v2133_v28, %v209_v37  ;;  %v1690_v37 = vpack.c.bf16 %v2035_v46, %v2033_v45 }
  0x28   :  { %1659 = vmatprep.subr.bf16.mxu1 %v1658_v51  ;;  %1755 = vmatprep.subr.bf16.mxu0 %v1754_v41  ;;  %v1666_v11 = vpack.c.bf16 %v190_v63, %v183_v62  ;;  %v232_v21 = vand.u32 4294901760, %v231_v33 }
  0x29   :  { %1449 = vmatprep.mubr.f32.mxu1 %v1961_v23  ;;  %1554 = vmatprep.mubr.f32.mxu0 %v1961_v23  ;;  %v211_v19 = vand.u32 4294901760, %v210_v8 }
  0x2b   :  { %1661 = vmatpush3.bf16.msra.mxu1 %v1658_v51  ;;  %1757 = vmatpush3.bf16.msra.mxu0 %v1754_v41  ;;  %v1674_v41 = vpack.c.bf16 %v218_v20, %v211_v19  ;;  %v1678_v51 = vpack.c.bf16 %v232_v21, %v225_v55 }
  0x2c   :  { %1663 = vmatprep.subr.bf16.mxu1 %v1662_v2  ;;  %1759 = vmatprep.subr.bf16.mxu0 %v1758_v60 }
  0x2f   :  { %1665 = vmatpush3.bf16.msra.mxu1 %v1662_v2  ;;  %1761 = vmatpush3.bf16.msra.mxu0 %v1758_v60  ;;  %v1682_v60 = vpack.c.bf16 %v246_v58, %v239_v57 }
  0x30   :  { %1667 = vmatprep.subr.bf16.mxu1 %v1666_v11  ;;  %1763 = vmatprep.subr.bf16.mxu0 %v1762_v48 }
  0x33   :  { %1669 = vmatpush3.bf16.msra.mxu1 %v1666_v11  ;;  %1765 = vmatpush3.bf16.msra.mxu0 %v1762_v48 }
  0x34   :  { %1671 = vmatprep.subr.bf16.mxu1 %v1670_v32  ;;  %1767 = vmatprep.subr.bf16.mxu0 %v1766_v17 }
  0x37   :  { %1673 = vmatpush3.bf16.msra.mxu1 %v1670_v32  ;;  %1769 = vmatpush3.bf16.msra.mxu0 %v1766_v17 }
  0x38   :  { %1675 = vmatprep.subr.bf16.mxu1 %v1674_v41  ;;  %1771 = vmatprep.subr.bf16.mxu0 %v1770_v50 }
  0x3b   :  { %1677 = vmatpush3.bf16.msra.mxu1 %v1674_v41  ;;  %1773 = vmatpush3.bf16.msra.mxu0 %v1770_v50 }
  0x3c   :  { %1679 = vmatprep.subr.bf16.mxu1 %v1678_v51  ;;  %1775 = vmatprep.subr.bf16.mxu0 %v1774_v56 }
  0x3f   :  { %1681 = vmatpush3.bf16.msra.mxu1 %v1678_v51  ;;  %1777 = vmatpush3.bf16.msra.mxu0 %v1774_v56 }
  0x40   :  { %1683 = vmatprep.subr.bf16.mxu1 %v1682_v60  ;;  %1779 = vmatprep.subr.bf16.mxu0 %v1778_v30 }
  0x43   :  { %1685 = vmatpush3.bf16.msra.mxu1 %v1682_v60  ;;  %1781 = vmatpush3.bf16.msra.mxu0 %v1778_v30 }
  0x44   :  { %1687 = vmatprep.subr.bf16.mxu1 %v1686_v36  ;;  %1783 = vmatprep.subr.bf16.mxu0 %v1914_v10 }
  0x46   :  { %1450 = vmatmul.mubr.f32.vlgmr.msra.gmra.mrb[0].mxu1 %v2023_v42  ;;  %1555 = vmatmul.mubr.f32.vlgmr.msra.gmra.mrb[0].mxu0 %v2023_v42 }
  0x47   :  { %1689 = vmatpush3.bf16.msra.mxu1 %v1686_v36  ;;  %1785 = vmatpush3.bf16.msra.mxu0 %v1914_v10  ;;  %v1702_v10 = vpack.c.bf16 %v2119_v15, %v2114_v14 }
  0x48   :  { %1691 = vmatprep.subr.bf16.mxu1 %v1690_v37  ;;  %1787 = vmatprep.subr.bf16.mxu0 %v1918_v13 }
  0x49   :  { %1484 = vmatprep.mubr.f32.mxu1 %v1966_v24  ;;  %1589 = vmatprep.mubr.f32.mxu0 %v1961_v23  ;;  %v1714_v23 = vpack.c.bf16 %v2170_v12, %v2165_v49  ;;  %v739_v24 = vld [vmem:[%s2244_s2] sm:$0xff]  ;;  %s1869_s2 = smov [#allocation2]  }
  0x4a   :  { %s1245_s21 = sshll.u32 %s1869_s2, 4  ;;  %s1246_s21 = int_to_ptr.vmem [resolvable:$true] %s1245_s21 }
  0x4b   :  { %1693 = vmatpush3.bf16.msra.mxu1 %v1690_v37  ;;  %1789 = vmatpush3.bf16.msra.mxu0 %v1918_v13  ;;  %v1706_v13 = vpack.c.bf16 %v2138_v44, %v2133_v28  ;;  %s1845_s22 = scalar_lea.vmem %s1246_s21, 256  ;;  %p1850_p1 = scmp.lt.s32.totalorder %s1246_s21, %s1246_s21 }
  0x4c   :  { %1695 = vmatprep.subr.bf16.mxu1 %v1694_v34  ;;  %1791 = vmatprep.subr.bf16.mxu0 %v1947_v18  ;;  %p1846_p0 = scmp.ne.s32.totalorder %s1246_s21, %s1845_s22  ;;  %p1851_p2 = scmp.lt.s32.totalorder %s1845_s22, %s1845_s22 }
  0x4e   :  { %p1852_p3 = por %p1851_p2, %p1850_p1 }
  0x4f   :  { %1697 = vmatpush3.bf16.msra.mxu1 %v1694_v34  ;;  %1793 = vmatpush3.bf16.msra.mxu0 %v1947_v18  ;;  %v1710_v18 = vpack.c.bf16 %v2154_v39, %v2145_v29 }
  0x50   :  { %1699 = vmatprep.subr.bf16.mxu1 %v1698_v38  ;;  %1795 = vmatprep.subr.bf16.mxu0 %v1979_v26  ;;  %p1853_p4 = pnand %p1852_p3, %p1846_p0 }
  0x53   :  { %1701 = vmatpush3.bf16.msra.mxu1 %v1698_v38  ;;  %1797 = vmatpush3.bf16.msra.mxu0 %v1979_v26  ;;  %v2219_v26 = vand.u32 4294901760, %v739_v24 }
  0x54   :  { %1703 = vmatprep.subr.bf16.mxu1 %v1702_v10  ;;  %1799 = vmatprep.subr.bf16.mxu0 %v2007_v35 }
  0x57   :  { %1705 = vmatpush3.bf16.msra.mxu1 %v1702_v10  ;;  %1801 = vmatpush3.bf16.msra.mxu0 %v2007_v35  ;;  %v835_v35 = vsub.f32 %v739_v24, %v2219_v26 }
  0x58   :  { %1707 = vmatprep.subr.bf16.mxu1 %v1706_v13  ;;  %1803 = vmatprep.subr.bf16.mxu0 %v2043_v47 }
  0x59   :  { %v836_v45 = vand.u32 4294901760, %v835_v35 }
  0x5b   :  { %1709 = vmatpush3.bf16.msra.mxu1 %v1706_v13  ;;  %1805 = vmatpush3.bf16.msra.mxu0 %v2043_v47  ;;  %v837_v46 = vsub.f32 %v835_v35, %v836_v45 }
  0x5c   :  { %1711 = vmatprep.subr.bf16.mxu1 %v1710_v18  ;;  %1807 = vmatprep.subr.bf16.mxu0 %v2074_v59 }
  0x5f   :  { %1713 = vmatpush3.bf16.msra.mxu1 %v1710_v18  ;;  %1809 = vmatpush3.bf16.msra.mxu0 %v2074_v59 }
  0x60   :  { %1715 = vmatprep.subr.bf16.mxu1 %v1714_v23  ;;  %1811 = vmatprep.subr.bf16.mxu0 %v2090_v0 }
  0x63   :  { %1717 = vmatpush3.bf16.msra.mxu1 %v1714_v23  ;;  %1813 = vmatpush3.bf16.msra.mxu0 %v2090_v0 }
  0x64   :  { %1607 = vmatprep.subr.mxu1 %v2219_v26  ;;  %1592 = vmatprep.subr.mxu0 %v2219_v26 }
  0x66   :  { %1485 = vmatmul.mubr.f32.vlgmr.msra.gmra.mrb[0].mxu1 %v2055_v53  ;;  %1590 = vmatmul.mubr.f32.vlgmr.msra.gmra.mrb[0].mxu0 %v2023_v42  ;;  %v838_v42 = vand.u32 4294901760, %v837_v46 }
  0x67   :  { %1608 = vmatpush3.msra.mxu1 %v2219_v26  ;;  %1593 = vmatpush3.msra.mxu0 %v2219_v26 }
  0x68   :  { %1612 = vmatprep.subr.mxu1 %v836_v45  ;;  %1597 = vmatprep.subr.mxu0 %v838_v42 }
 0x139   :  { %v1486_v47 = vpop.f32.mrb[0].mxu1  ;;  %v1591_v53 = vpop.f32.mrb[0].mxu0 }
 0x13a   :  { %v1814_v54 = vadd.f32 %v1591_v53, %v1486_v47  ;;  %v393_v59 = vpop.f32.mrb[1].mxu1  ;;  %v709_v61 = vpop.f32.mrb[1].mxu0 }
 0x13b   :  { %v1815_v0 = vadd.f32 %v709_v61, %v393_v59 }
 0x13c   :  { %1837 = vrsqrt.f32 %v1814_v54  ;;  %vm728_vm0 = vcmp.eq.f32.partialorder %v1814_v54, inf  ;;  %v731_v15 = vand.u32 2147483648, %v1814_v54  ;;  %vm730_vm1 = vcmp.eq.f32.partialorder %v1814_v54, 0.0 }
 0x13d   :  { %1839 = vrsqrt.f32 %v1815_v0  ;;  %vm721_vm2 = vcmp.eq.f32.partialorder %v1815_v0, inf  ;;  %v724_v29 = vand.u32 2147483648, %v1815_v0  ;;  %vm723_vm3 = vcmp.eq.f32.partialorder %v1815_v0, 0.0 }
 0x146   :  { %v1838_v6 = vpop.eup %1837 }
 0x147   :  { %v1840_v7 = vpop.eup %1839  ;;  %v727_v14 = vmul.f32 %v1838_v6, %v1814_v54 }
 0x148   :  { %v720_v28 = vmul.f32 %v1840_v7, %v1815_v0 }
 0x149   :  { %v729_v44 = vsel %vm728_vm0, %v1814_v54, %v727_v14 }
 0x14a   :  { %v732_v1 = vsel %vm730_vm1, %v731_v15, %v729_v44  ;;  %v722_v2 = vsel %vm721_vm2, %v1815_v0, %v720_v28 }
 0x14b   :  { %v734_v62 = vadd.f32 1e-12, %v732_v1  ;;  %v725_v63 = vsel %vm723_vm3, %v724_v29, %v722_v2 }
 0x14c   :  { %v733_v39 = vadd.f32 1e-12, %v725_v63 }
 0x14d   :  { %1841 = vrcp.f32 %v734_v62 }
 0x14e   :  { %1843 = vrcp.f32 %v733_v39 }
 0x157   :  { %v1842_v48 = vpop.eup %1841 }
 0x158   :  { %v1844_v3 = vpop.eup %1843  ;;  %v745_v4 = vsel %vm740_vm4, %v1842_v48, 0 }
 0x159   :  { %v742_v5 = vsel %vm740_vm4, %v1844_v3, 0  ;;  %v823_v8 = vand.u32 4294901760, %v745_v4 }
 0x15a   :  { %v813_v9 = vand.u32 4294901760, %v742_v5 }
 0x15b   :  { %v824_v11 = vsub.f32 %v745_v4, %v823_v8 }
 0x15c   :  { %v814_v40 = vsub.f32 %v742_v5, %v813_v9 }
 0x15d   :  { %v825_v49 = vand.u32 4294901760, %v824_v11 }
 0x15e   :  { %v815_v12 = vand.u32 4294901760, %v814_v40 }
 0x15f   :  { %v826_v17 = vsub.f32 %v824_v11, %v825_v49 }
 0x160   :  { %1609 = vmatprep.mubr.f32.mxu1 %v815_v12  ;;  %v816_v19 = vsub.f32 %v814_v40, %v815_v12 }
 0x161   :  { %1610 = vmatmul.mubr.f32.vlgmr.msra.gmra.mrb[2].mxu1 %v825_v49  ;;  %v827_v31 = vand.u32 4294901760, %v826_v17 }
 0x162   :  { %1614 = vmatprep.mubr.f32.mxu1 %v813_v9  ;;  %v817_v20 = vand.u32 4294901760, %v816_v19  ;;  %1613 = vmatpush3.msra.mxu1 %v836_v45 }
 0x163   :  { %1617 = vmatprep.subr.mxu1 %v2219_v26 }
 0x164   :  { %1594 = vmatprep.mubr.f32.mxu0 %v817_v20 }
 0x165   :  { %1595 = vmatmul.mubr.f32.vlgmr.msra.gmra.mrb[2].mxu0 %v827_v31 }
 0x166   :  { %1598 = vmatpush3.msra.mxu0 %v838_v42  ;;  %1599 = vmatprep.mubr.f32.mxu0 %v813_v9 }
 0x167   :  { %1602 = vmatprep.subr.mxu0 %v835_v35 }
 0x169   :  { %1615 = vmatmul.mubr.f32.vlgmr.msra.gmra.mrb[2].mxu1 %v823_v8 }
 0x16a   :  { %1619 = vmatprep.mubr.f32.mxu1 %v813_v9  ;;  %1618 = vmatpush3.msra.mxu1 %v2219_v26 }
 0x16d   :  { %1600 = vmatmul.mubr.f32.vlgmr.msra.gmra.mrb[2].mxu0 %v823_v8 }
 0x16e   :  { %1603 = vmatpush3.msra.mxu0 %v835_v35  ;;  %1604 = vmatprep.mubr.f32.mxu0 %v814_v40 }
 0x171   :  { %1620 = vmatmul.mubr.f32.vlgmr.msra.gmra.mrb[2].mxu1 %v823_v8 }
 0x175   :  { %1605 = vmatmul.mubr.f32.vlgmr.msra.gmra.mrb[2].mxu0 %v824_v11 }
 0x244   :  { %v1621_v32 = vpop.f32.mrb[2].mxu1 }
 0x245   :  { %v1226_v33 = vpop.f32.mrb[3].mxu1 }
 0x248   :  { %v1606_v43 = vpop.f32.mrb[2].mxu0 }
 0x249   :  { %v1816_v52 = vadd.f32 %v1621_v32, %v1606_v43  ;;  %v985_v50 = vpop.f32.mrb[3].mxu0 }
 0x24a   :  { %v1817_v55 = vadd.f32 %v1226_v33, %v985_v50 }
 0x24b   :  { %v1237_v41 = vmul.f32 %v1816_v52, %v1971_v25 }
 0x24c   :  { %v1236_v21 = vmul.f32 %v1817_v55, %v1935_v16 }
 0x24d   :  { %1239 = vst [vmem:[#allocation2 + $0x8] sm:$0xff] %v1237_v41 }
 0x24e   :  { %1238 = vst [vmem:[#allocation2] sm:$0xff] %v1236_v21 }
 0x24f   :  { %1856 = shalt.err (!%p1853_p4)
}
 0x250   :  { %s1857_s25 = scalar_lea.hbm %s2245_s3, 256 }
 0x251   :  { %p1858_p5 = scmp.ne.s32.totalorder %s2245_s3, %s1857_s25  ;;  %p1861_p6 = scmp.lt.u32.totalorder %s1857_s25, %s2245_s3 }
 0x253   :  { %p1863_p7 = pnand %p1861_p6, %p1858_p5 }
 0x255   :  { %1866 = shalt.err (!%p1863_p7)
}
 0x256   :  { %s1870_s30 = smov 128   ;;  %s1871_s4 = smov 8  }
 0x257   :  { %1251 = dma.vmem_to_hbm [thread:$0]  %s1246_s21, 256, %s2245_s3, [#allocation3], %s1870_s30, %s1870_s30, %s1871_s4  }
 0x258   :  { %1867 = dma.done.wait [#allocation3], 256  }
 0x259   :  { %1868 = vsyncadd [#allocation3], 4294967040 }
 0x25a   :  { %1255 = vsyncpa [#allocation3], 1 }

</bundles_post_ra>
